<compile_context>
chip_gen: v7x
topology: tpu7x:2x2x1
jax: 0.10.0
libtpu: 0.0.40
codegen_flags: <defaults>
</compile_context>

<pallas_src>
import jax
import jax.numpy as jnp
from jax.experimental import pallas as pl
from jax.experimental.pallas import tpu as pltpu


def _ce_ie_kernel(logits_ref, lse_ref, reg_ref):
    """Per batch-tile: emit per-row logsumexp and per-row sum_c p*log p."""
    x = logits_ref[...].astype(jnp.float32)            # [bB, C] cast on the VMEM tile
    m = jnp.max(x, axis=1, keepdims=True)              # [bB, 1]  (XLU)
    z = x - m                                          # [bB, C]  (VPU)
    # Guard masked (-inf) logits: keep z finite so e*z is 0*finite = 0, not 0*(-inf)=NaN.
    # exp() underflows to 0 long before -1e30, so this never changes valid rows.
    z = jnp.maximum(z, jnp.float32(-1e30))             # [bB, C]  (VPU)
    e = jnp.exp(z)                                     # [bB, C]  (EUP)
    s = jnp.sum(e, axis=1, keepdims=True)              # [bB, 1]  (XLU)
    ez = jnp.sum(e * z, axis=1, keepdims=True)         # [bB, 1]  (VPU mul + XLU)
    r = pl.reciprocal(s, approx=True)                  # per-row EUP reciprocal
    inv_s = r * (2.0 - s * r)                          # one Newton step -> ~f32 accuracy
    log_s = jnp.log(s)                                 # per-row log only
    lse_ref[...] = m + log_s                           # row logsumexp
    # sum_c p*log p == (sum_c e*z)/s - log s   (since sum_c p == 1);
    # differs from torch's p*log(p + ita) only by O(C*ita) ~ 1e-9.
    reg_ref[...] = ez * inv_s - log_s


def _vmem_budget_bytes():
    """~0.75x of this generation's physical VMEM (48 MiB v7x, 96 MiB v5e/v6e)."""
    cap = 64 << 20
    try:
        info = pltpu.get_tpu_info()
        cap = int(getattr(info, "vmem_capacity_bytes", cap))
    except Exception:
        pass
    return (cap // 4) * 3


def ce_ie_loss(logits, labels, *, eps=0.0003, ita=1e-10, block_b=None):
    """logits: [B, C] float (any float dtype, kept native), labels: [B] int.
    Returns (loss_total, ce, reg) f32 scalars, matching CE_IELoss.forward."""
    del ita  # folded away: reg uses p*log p == p*log(p + ita) up to O(ita)
    B, C = logits.shape
    itemsize = jnp.dtype(logits.dtype).itemsize
    sublane_pack = 8 * max(1, 4 // itemsize)            # 8 f32, 16 bf16, 32 int8/fp8
    budget = _vmem_budget_bytes()

    if block_b is None:
        # per-row VMEM: double-buffered native input + ~4 live full-width f32 temps
        per_row = C * (2 * itemsize + 4 * 4) + 64
        rows_vmem = max(1, (budget - (2 << 20)) // per_row)
        # amortize ~0.35us/step grid overhead: target ~4M logits elements per tile
        rows_target = max(1, (4 * 1024 * 1024) // max(C, 1))
        bb = min(rows_vmem, rows_target)
        if bb >= B:
            block_b = B
        else:
            block_b = max(sublane_pack, (bb // sublane_pack) * sublane_pack)
    else:
        block_b = int(block_b)
        block_b = B if block_b >= B else max(8, (block_b // 8) * 8)

    num_blocks = pl.cdiv(B, block_b)
    b_pad = num_blocks * block_b

    # VMEM limit: tile working set + headroom, capped by the generation budget.
    tile_vmem = block_b * C * (2 * itemsize + 4 * 4) + 8 * block_b * 4 + (2 << 20)
    vmem_limit = int(min(budget, max(32 << 20, tile_vmem)))

    cost = pl.CostEstimate(
        flops=7 * B * C + 16 * B,
        transcendentals=B * C + 2 * B,
        bytes_accessed=B * C * itemsize + 2 * b_pad * 4,
    )

    row_spec = pl.BlockSpec((block_b, 1), lambda i: (i, 0))
    lse_rows, reg_rows = pl.pallas_call(
        _ce_ie_kernel,
        out_shape=(jax.ShapeDtypeStruct((b_pad, 1), jnp.float32),
                   jax.ShapeDtypeStruct((b_pad, 1), jnp.float32)),
        grid_spec=pltpu.PrefetchScalarGridSpec(
            num_scalar_prefetch=0,
            grid=(num_blocks,),
            # TODO(synk): if profiling on v5e shows exposed DMA at this tile size,
            # add pipeline_mode=pl.Buffered(3) to the logits BlockSpec.
            in_specs=[pl.BlockSpec((block_b, C), lambda i: (i, 0))],   # native dtype
            out_specs=(row_spec, row_spec),
        ),
        compiler_params=pltpu.CompilerParams(
            dimension_semantics=("parallel",),   # no cross-step carry -> megacore-able
            vmem_limit_bytes=vmem_limit,
        ),
        cost_estimate=cost,
    )(logits)

    # Padded-tail rows (last ragged block) are simply discarded by the [:B] slice.
    lse = lse_rows[:B, 0]
    ent = reg_rows[:B, 0]
    labels = labels.astype(jnp.int32)
    picked = jnp.take_along_axis(logits, labels[:, None], axis=1)[:, 0]
    picked = picked.astype(jnp.float32)
    ce = jnp.mean(lse - picked)          # == -mean(log p[i, y_i])
    reg = jnp.mean(ent)                  # == mean(sum_c p*log p)
    loss_total = ce + reg * jnp.float32(eps)
    return loss_total, ce, reg


if __name__ == "__main__":
    key = jax.random.PRNGKey(0)
    k1, k2 = jax.random.split(key)

    # --- test 1: bf16 logits, two full tiles (block_b=8 -> grid=(2,)) ---
    B, C = 16, 32
    logits = jax.random.normal(k1, (B, C), dtype=jnp.float32).astype(jnp.bfloat16)
    labels = jax.random.randint(k2, (B,), 0, C, dtype=jnp.int32)

    loss_total, ce, reg = ce_ie_loss(logits, labels, eps=0.0003, ita=1e-10, block_b=8)
    jax.block_until_ready((loss_total, ce, reg))

    x = logits.astype(jnp.float32)
    p = jax.nn.softmax(x, axis=1)
    ce_ref = -jnp.mean(jnp.log(p)[jnp.arange(B), labels])
    reg_ref = jnp.mean(jnp.sum(p * jnp.log(p + 1e-10), axis=1))
    loss_ref = ce_ref + reg_ref * 0.0003
    assert jnp.allclose(ce, ce_ref, atol=1e-4), (ce, ce_ref)
    assert jnp.allclose(reg, reg_ref, atol=1e-4), (reg, reg_ref)
    assert jnp.allclose(loss_total, loss_ref, atol=1e-4), (loss_total, loss_ref)

    # --- test 2: f32 logits, ragged batch (B=20, block_b=8 -> padded last block) ---
    B2 = 20
    logits2 = jax.random.normal(jax.random.PRNGKey(1), (B2, C), dtype=jnp.float32)
    labels2 = jax.random.randint(jax.random.PRNGKey(2), (B2,), 0, C, dtype=jnp.int32)
    l2, c2, r2 = ce_ie_loss(logits2, labels2, block_b=8)
    jax.block_until_ready((l2, c2, r2))

    p2 = jax.nn.softmax(logits2, axis=1)
    ce2_ref = -jnp.mean(jnp.log(p2)[jnp.arange(B2), labels2])
    reg2_ref = jnp.mean(jnp.sum(p2 * jnp.log(p2 + 1e-10), axis=1))
    assert jnp.allclose(c2, ce2_ref, atol=1e-4), (c2, ce2_ref)
    assert jnp.allclose(r2, reg2_ref, atol=1e-4), (r2, reg2_ref)
    assert jnp.allclose(l2, ce2_ref + reg2_ref * 0.0003, atol=1e-4)

    # --- test 3: auto block_b (single full-batch block, exercises the auto-sizing path) ---
    l3, c3, r3 = ce_ie_loss(logits2, labels2)
    jax.block_until_ready((l3, c3, r3))
    assert jnp.allclose(c3, ce2_ref, atol=1e-4), (c3, ce2_ref)
    assert jnp.allclose(r3, reg2_ref, atol=1e-4), (r3, reg2_ref)

    print("KERNEL_OK")
</pallas_src>

<mosaic_0001>
module attributes {stable_mosaic.version = 11 : i64} {
  func.func @_ce_ie_kernel(%arg0: i32, %arg1: memref<8x32xbf16, #tpu.memory_space<vmem>>, %arg2: memref<8x1xf32, #tpu.memory_space<vmem>>, %arg3: memref<8x1xf32, #tpu.memory_space<vmem>>) attributes {dimension_semantics = [#tpu.dimension_semantics<parallel>], iteration_bounds = array<i64: 2>, scalar_prefetch = 0 : i64, scratch_operands = 0 : i64, tpu.core_type = #tpu.core_type<tc>, window_params = [{transform_indices = @transform_0, window_bounds = array<i64: 8, 32>}, {transform_indices = @transform_1, window_bounds = array<i64: 8, 1>}, {transform_indices = @transform_2, window_bounds = array<i64: 8, 1>}]} {
    %c0 = arith.constant 0 : index
    %c0_0 = arith.constant 0 : index
    %0 = vector.load %arg1[%c0, %c0_0] : memref<8x32xbf16, #tpu.memory_space<vmem>>, vector<8x32xbf16>
    %1 = arith.extf %0 : vector<8x32xbf16> to vector<8x32xf32>
    %cst = arith.constant dense<0xFF800000> : vector<8xf32>
    %2 = vector.multi_reduction <maximumf>, %1, %cst [1] : vector<8x32xf32> to vector<8xf32>
    %3 = vector.shape_cast %2 : vector<8xf32> to vector<8x1xf32>
    %4 = vector.broadcast %3 : vector<8x1xf32> to vector<8x32xf32>
    %5 = arith.subf %1, %4 : vector<8x32xf32>
    %cst_1 = arith.constant -1.000000e+30 : f32
    %6 = vector.broadcast %cst_1 : f32 to vector<8x32xf32>
    %7 = arith.maximumf %5, %6 : vector<8x32xf32>
    %8 = math.exp %7 : vector<8x32xf32>
    %cst_2 = arith.constant dense<0.000000e+00> : vector<8xf32>
    %9 = vector.multi_reduction <add>, %8, %cst_2 [1] : vector<8x32xf32> to vector<8xf32>
    %10 = vector.shape_cast %9 : vector<8xf32> to vector<8x1xf32>
    %11 = arith.mulf %8, %7 : vector<8x32xf32>
    %cst_3 = arith.constant dense<0.000000e+00> : vector<8xf32>
    %12 = vector.multi_reduction <add>, %11, %cst_3 [1] : vector<8x32xf32> to vector<8xf32>
    %13 = vector.shape_cast %12 : vector<8xf32> to vector<8x1xf32>
    %14 = tpu.reciprocal %10 {approx = true} : vector<8x1xf32> -> vector<8x1xf32>
    %15 = arith.mulf %10, %14 : vector<8x1xf32>
    %cst_4 = arith.constant 2.000000e+00 : f32
    %16 = vector.broadcast %cst_4 : f32 to vector<8x1xf32>
    %17 = arith.subf %16, %15 : vector<8x1xf32>
    %18 = arith.mulf %14, %17 : vector<8x1xf32>
    %19 = math.log %10 : vector<8x1xf32>
    %20 = arith.addf %3, %19 : vector<8x1xf32>
    %c0_5 = arith.constant 0 : index
    %c0_6 = arith.constant 0 : index
    %21 = vector.load %arg2[%c0_5, %c0_6] : memref<8x1xf32, #tpu.memory_space<vmem>>, vector<8x1xf32>
    tpu.vector_store %arg2[%c0_5, %c0_6], %20 {strides = array<i32>} : memref<8x1xf32, #tpu.memory_space<vmem>>, vector<8x1xf32>,
    %22 = arith.mulf %13, %18 : vector<8x1xf32>
    %23 = arith.subf %22, %19 : vector<8x1xf32>
    %c0_7 = arith.constant 0 : index
    %c0_8 = arith.constant 0 : index
    %24 = vector.load %arg3[%c0_7, %c0_8] : memref<8x1xf32, #tpu.memory_space<vmem>>, vector<8x1xf32>
    tpu.vector_store %arg3[%c0_7, %c0_8], %23 {strides = array<i32>} : memref<8x1xf32, #tpu.memory_space<vmem>>, vector<8x1xf32>,
    return
  }
  func.func @transform_0(%arg0: i32) -> (i32, i32) {
    %c0_i32 = arith.constant 0 : i32
    %c0_i32_0 = arith.constant 0 : i32
    return %arg0, %c0_i32 : i32, i32
  }
  func.func @transform_1(%arg0: i32) -> (i32, i32) {
    %c0_i32 = arith.constant 0 : i32
    %c0_i32_0 = arith.constant 0 : i32
    return %arg0, %c0_i32 : i32, i32
  }
  func.func @transform_2(%arg0: i32) -> (i32, i32) {
    %c0_i32 = arith.constant 0 : i32
    %c0_i32_0 = arith.constant 0 : i32
    return %arg0, %c0_i32 : i32, i32
  }
}

</mosaic_0001>

<bundles_post_ra>
// kernel: tpu_custom_call.1
= control target key start
LH: loop header
LB: loop body
LE: loop exit
PB: predicated region body
PF: predicated region fallthrough
CT: control target
= control target key end

     0   :  { %8 = vsyncpa [#allocation3], 0  ;;  %s543_s0 = inlined_call_operand.hbm [shape: bf16[16,32], index: 0, kind: input, shape index: {}]   ;;  %s544_s1 = inlined_call_operand.vmem [shape: f32[16,1], index: 1, kind: output, shape index: {0}]   ;;  %s545_s2 = inlined_call_operand.vmem [shape: f32[16,1], index: 2, kind: output, shape index: {1}]  }
   0x1   :  { %10 = vsyncpa [#allocation3 + $0x1], 0  ;;  %s433_s9 = smov 0   ;;  %s435_s10 = smov 0  }
   0x2   :  { %s437_s11 = smov 0   ;;  %s439_s12 = smov 0  }
   0x3 LB: > { %s452_s13 = sadd.s32 4294967295, %s415_s12   ;;  %s455_s14 = sadd.s32 1, %s415_s12   ;;  %s415_s12 = sphi %s439_s12, %s553_s12   ;;  %s411_s11 = sphi %s437_s11, %s552_s11   ;;  %s407_s10 = sphi %s435_s10, %s551_s10   ;;  %s403_s9 = sphi %s433_s9, %s550_s9  }
   0x4   : > { %s20_s15 = ssub.s32 %s415_s12, %s455_s14  ;;  %s23_s16 = sadd.s32 1, %s411_s11 }
   0x5   : > { %p21_p0 = scmp.eq.s32.totalorder %s20_s15, 0  ;;  %p30_p1 = scmp.ne.s32.totalorder %s411_s11, %s407_s10 }
   0x6   : > { %p31_p2 = scmp.eq.s32.totalorder %s415_s12, 0  ;;  %p36_p3 = scmp.ne.s32.totalorder %s407_s10, %s403_s9 }
   0x7   : > { %s465_s17 = scalar_select %p21_p0, %s411_s11, %s23_s16  }
   0x8   : > { %p32_p4 = por %p31_p2, %p30_p1  ;;  %p37_p5 = scmp.eq.s32.totalorder %s452_s13, 0 }
   0x9   : > { %p312_p6 = scmp.lt.s32.totalorder %s415_s12, 2  ;;  %s112_s19 = sand.u32 1, %s411_s11  }
   0xa   : > { %p469_p7 = por %p37_p5, %p36_p3  ;;  %s298_s20 = sshll.u32 %s112_s19, 2 }
   0xb   : > { %s299_s21 = sshll.u32 %s415_s12, 6  ;;  %s116_s25 = scalar_lea.vmem [#allocation2], %s298_s20 }
   0xc   : > { %s478_s24 = scalar_lea.hbm %s543_s0, %s299_s21  ;;  %s123_s26 = sshll.u32 %s116_s25, 4  ;;  %s480_s26 = int_to_ptr.vmem [resolvable:$true] %s123_s26 }
   0xd   : > { %p482_p8 = pnand %p312_p6, %p32_p4  ;;  %s113_s28 = scalar_lea.sflag [#allocation3], %s112_s19 }
   0xe   : > { %s351_s29 = scalar_lea.hbm %s478_s24, 64  ;;  %s356_s4 = scalar_lea.hbm %s543_s0, 128 }
   0xf   : > { %p352_p11 = scmp.ne.s32.totalorder %s478_s24, %s351_s29  ;;  %p353_p12 = pneg %p482_p8 }
  0x10   : > { %p357_p1 = scmp.lt.u32.totalorder %s478_s24, %s543_s0  ;;  %p358_p2 = scmp.lt.u32.totalorder %s356_s4, %s351_s29 }
  0x11   : > { %p354_p13 = pnand %p353_p12, %p352_p11  ;;  %p360_p4 = scmp.lt.u32.totalorder %s351_s29, %s478_s24 }
  0x12   : > { %p359_p3 = por %p358_p2, %p357_p1 }
  0x13   : > { %p355_p0 = pneg %p354_p13 }
  0x14   : > { %p361_p5 = por %p360_p4, %p359_p3 }
  0x16   : > { %p362_p6 = pnand %p361_p5, %p355_p0 }
  0x18   : > { %365 = shalt.err (!%p362_p6)
}
  0x19   : > { %s366_s7 = scalar_lea.vmem %s480_s26, 64  ;;  %s417_s8 = smov [#allocation2]  }
  0x1a   : > { %p367_p11 = scmp.ne.s32.totalorder %s480_s26, %s366_s7  ;;  %s371_s9 = sshll.u32 %s417_s8, 4  ;;  %s372_s9 = int_to_ptr.vmem [resolvable:$false] %s371_s9 }
  0x1b   : > { %s373_s15 = scalar_lea.vmem %s372_s9, 128  ;;  %p374_p10 = scmp.lt.s32.totalorder %s480_s26, %s372_s9 }
  0x1c   : > { %p369_p13 = pnand %p367_p11, %p353_p12  ;;  %p375_p1 = scmp.lt.s32.totalorder %s373_s15, %s366_s7 }
  0x1e   : > { %p370_p9 = pneg %p369_p13  ;;  %p376_p2 = por %p375_p1, %p374_p10 }
  0x20   : > { %p377_p3 = pnand %p376_p2, %p370_p9 }
  0x22   : > { %380 = shalt.err (!%p377_p3)
}
  0x23   : > { %311 = dma.hbm_to_vmem [thread:$0]  (!%p482_p8), %s478_s24, 64, %s480_s26, %s113_s28  }
  0x24   : > { %p548_p0 = scmp.lt.s32.totalorder %s415_s12, 3  ;;  %p549_p4 = scmp.ge.s32.totalorder %s415_s12, 1 }
  0x26   : > { %p129_p12 = pnand %p549_p4, %p548_p0 }
  0x27   : > { %s134_s16 = sand.u32 (!%p129_p12), 1, %s407_s10  }
  0x28   : > { %132 = sbr.rel (%p129_p12) target bundleno = 376 (0x178), region = 24  ;;  %s301_s19 = sshll.u32 (!%p129_p12), %s134_s16, 2 }
  0x29   : > { %s135_s20 = scalar_lea.sflag (!%p129_p12), [#allocation3], %s134_s16  ;;  %s138_s21 = scalar_lea.vmem (!%p129_p12), [#allocation2], %s301_s19 }
  0x2f   : > { %398 = dma.done.wait (%p469_p7), %s135_s20, 64  }
  0x30   : > { %400 = vsyncadd (%p469_p7), %s135_s20, 4294967232  ;;  %v170_v0 = vld [vmem:[%s138_s21] sm:$0xf]  ;;  %vm172_vm0 = vcmask 261120   ;;  %p162_p7 = scmp.lt.s32.totalorder %s452_s13, 1  ;;  %vm194_vm1 = vcmask 7168  }
  0x31   : > { %v171_v1 = vunpack.c.l.bf16 %v170_v0 }
  0x32   : > { %s555_s13 = smov (!%p162_p7, %s452_s13), 1 }
  0x33   : > { %v173_v2 = vsel %vm172_vm0, %v171_v1, -inf  ;;  %s302_s12 = sshll.u32 %s555_s13, 3 }
  0x34   : > { %174 = vmax.xlane.f32.xlu0 %v173_v2  ;;  %s165_s23 = scalar_lea.vmem %s544_s1, %s302_s12  ;;  %s169_s26 = scalar_lea.vmem %s545_s2, %s302_s12 }
  0xc1   : > { %v175_v3 = vpop.xlane.xlu0 %174 }
  0xc2   : > { %v176_v4 = vsub.f32 %v171_v1, %v175_v3 }
  0xc4   : > { %v177_v5 = vmax.f32 %v176_v4, -1e+30 }
  0xc6   : > { %v178_v6 = vmul.f32 1.442695, %v177_v5 }
  0xc8   : > { %345 = vpow2.f32 %v178_v6 }
  0xd2   : > { %v346_v7 = vpop.eup %345 }
  0xd3   : > { %v180_v8 = vsel %vm172_vm0, %v346_v7, 0.0  ;;  %v183_v9 = vmul.f32 %v346_v7, %v177_v5 }
  0xd4   : > { %181 = vadd.xlane.f32.xlu0 %v180_v8 }
  0xd5   : > { %v184_v10 = vsel %vm172_vm0, %v183_v9, 0.0 }
  0xd6   : > { %185 = vadd.xlane.f32.xlu1 %v184_v10 }
 0x161   : > { %v182_v11 = vpop.xlane.xlu0 %181 }
 0x162   : > { %347 = vrcp.f32 %v182_v11 }
 0x163   : > { %349 = vlog2.f32 %v182_v11  ;;  %v186_v19 = vpop.xlane.xlu1 %185 }
 0x16c   : > { %v348_v12 = vpop.eup %347 }
 0x16d   : > { %v350_v13 = vpop.eup %349  ;;  %v188_v14 = vmul.f32 %v348_v12, %v182_v11 }
 0x16e   : > { %v192_v15 = vmul.f32 0.6931472, %v350_v13 }
 0x16f   : > { %v189_v16 = vsub.f32 2.0, %v188_v14 }
 0x170   : > { %v193_v17 = vadd.f32 %v192_v15, %v175_v3 }
 0x171   : > { %v190_v18 = vmul.f32 %v348_v12, %v189_v16 }
 0x172   : > { %195 = vst.msk [vmem:[%s165_s23] sm:$0xff] %vm194_vm1, %v193_v17 }
 0x173   : > { %v196_v20 = vmul.f32 %v190_v18, %v186_v19 }
 0x175   : > { %v197_v21 = vsub.f32 %v196_v20, %v192_v15 }
 0x177   : > { %198 = vst.msk [vmem:[%s169_s26] sm:$0xff] %vm194_vm1, %v197_v21 }
 0x178 PF: > { %p13_p8 = scmp.ge.s32.totalorder %s455_s14, 4   ;;  %s550_s9 = smov %s407_s10 }
 0x179   : > { %s551_s10 = smov %s411_s11  ;;  %s552_s11 = smov %s465_s17 }
 0x17a   : > { %s553_s12 = smov %s455_s14  ;;  %15 = sbr.rel (!%p13_p8) target bundleno = 3 (0x3), region = 76 }
 0x181   :  { %232 = vsyncpa [#allocation3], 1 }
 0x182   :  { %234 = vsyncpa [#allocation3 + $0x1], 1 }

</bundles_post_ra>
